<compile_context>
chip_gen: v7x
topology: tpu7x:2x2x1
jax: 0.10.0
libtpu: 0.0.40
codegen_flags: <defaults>
</compile_context>

<pallas_src>
import functools
import math

import numpy as np
import jax
import jax.numpy as jnp
from jax.experimental import pallas as pl
from jax.experimental.pallas import tpu as pltpu


def _mixed_loss_kernel(p_ref, t_ref, *rest, nbt, tr, w, n_valid, has_perm):
    """Grid (NC, nbt).  p_ref/t_ref: [TR, W] flat lane-dense blocks (natural layout).

    Accumulates per-lane MSE / BCE sums into [8, W] output-resident accumulators.
    Lane l of the flat layout corresponds to variable (l % V).
    """
    if has_perm:
        m_ref, mse_ref, bce_ref = rest
    else:
        mse_ref, bce_ref = rest

    c = pl.program_id(0)          # core slice ("parallel"; 2 on v7x, 1 on v5e/v6e)
    b = pl.program_id(1)          # batch tile within the slice ("arbitrary")

    @pl.when(b == 0)
    def _init():
        mse_ref[...] = jnp.zeros_like(mse_ref)
        bce_ref[...] = jnp.zeros_like(bce_ref)

    p = p_ref[...].astype(jnp.float32)
    t = t_ref[...].astype(jnp.float32)

    if has_perm:
        # Align pred lanes with target lanes: within every V-lane group, lane j must
        # hold pred[:, shuffle[j]].  0/1 permutation matmul on the idle MXU; HIGHEST
        # precision makes multiplication by 1.0 exact (no bf16 truncation of pred).
        p = jnp.dot(p, m_ref[...], precision=jax.lax.Precision.HIGHEST,
                    preferred_element_type=jnp.float32)

    # ---- MSE: zero-padded tail contributes exactly 0 -> no mask needed.
    # (Invariant: the wrapper pads BOTH flattened inputs with zeros.)
    diff = p - t
    mse_ref[...] += jnp.sum(jnp.reshape(diff * diff, (tr // 8, 8, w)), axis=0)

    # ---- BCEWithLogits, stable form (log1p matches torch exactly).
    bce = jnp.maximum(p, 0.0) - p * t + jnp.log1p(jnp.exp(-jnp.abs(p)))

    row0 = (c * nbt + b) * tr
    tile_end = (row0 + tr) * w    # flat element index one past this tile

    @pl.when(tile_end <= n_valid)            # steady state: no mask work at all
    def _steady():
        bce_ref[...] += jnp.sum(jnp.reshape(bce, (tr // 8, 8, w)), axis=0)

    @pl.when(tile_end > n_valid)             # only tiles overlapping the pad tail
    def _boundary():
        ridx = jax.lax.broadcasted_iota(jnp.int32, (tr, w), 0)
        lidx = jax.lax.broadcasted_iota(jnp.int32, (tr, w), 1)
        gidx = (row0 + ridx) * w + lidx
        bce_m = jnp.where(gidx < n_valid, bce, 0.0)
        bce_ref[...] += jnp.sum(jnp.reshape(bce_m, (tr // 8, 8, w)), axis=0)


def _round_up(x, m):
    return ((x + m - 1) // m) * m


def _num_parallel_default():
    # v7x has 2 TensorCores per chip; v5e / v6e have 1 (an extra grid split there
    # is pure overhead).
    # TODO(synk): on v7x confirm in the profiler that the leading "parallel" axis
    # actually lands on both cores; switch it to pltpu.CORE_PARALLEL if it does not.
    try:
        kind = jax.devices()[0].device_kind.lower()
    except Exception:
        return 1
    return 2 if "v7" in kind else 1


def mixed_loss_pallas(pred, target, shuffle_ordering, var_types,
                      orig_var_name_ordering, causal_ordering,
                      *, max_tile_rows=4096, num_parallel=None):
    """pred, target: [B, V]; shuffle_ordering: [V] int.

    Returns (total_loss, loss_tracking) matching MixedLoss.forward semantics.
    """
    B, V = pred.shape
    shuffle = jnp.asarray(shuffle_ordering, dtype=jnp.int32)
    N = B * V

    # Zero-copy lane-dense layout: row-major [B, V] flattens so flat index q holds
    # (batch q//V, variable q%V).  W is a multiple of 128 (lane tile) and of V, so
    # every W-lane row sees whole variable groups at fixed lane positions.
    W = (V * 128) // math.gcd(V, 128)          # lcm(V, 128); == 128 when V | 128

    # For modest W, permute pred inside the kernel (no host HBM passes).  For
    # pathological V with a huge lcm, fall back to one host gather of pred.
    has_perm = W <= 512

    NC = _num_parallel_default() if num_parallel is None else max(1, int(num_parallel))
    rows_needed = -(-N // W)
    NC = max(1, min(NC, -(-rows_needed // 8)))           # don't split tiny problems
    per_core_rows = -(-rows_needed // NC)
    # ~512K elements (~2 MiB f32) per input block: amortizes per-step overhead while
    # keeping 2 inputs x 2 buffers well under the v7x VMEM budget.
    tr_budget = max(8, ((512 * 1024) // W) // 8 * 8)
    TR = max(8, min(tr_budget, _round_up(int(max_tile_rows), 8),
                    _round_up(per_core_rows, 8)))
    nbt = -(-per_core_rows // TR)
    R_tot = NC * nbt * TR
    N_pad = R_tot * W

    if has_perm:
        p_src = pred
    else:
        # TODO(synk): single remaining host gather (one extra HBM pass) for the rare
        # case where lcm(V, 128) is too large for an in-kernel permutation matmul.
        p_src = jnp.take(pred, shuffle, axis=1)

    p_flat = jnp.ravel(p_src)
    t_flat = jnp.ravel(target)
    if N_pad != N:
        # Zero padding is load-bearing: MSE correctness relies on pad(pred)==pad(target)==0.
        p_flat = jnp.pad(p_flat, (0, N_pad - N))
        t_flat = jnp.pad(t_flat, (0, N_pad - N))
    P2 = p_flat.reshape(R_tot, W)
    T2 = t_flat.reshape(R_tot, W)

    kernel = functools.partial(_mixed_loss_kernel, nbt=nbt, tr=TR, w=W,
                               n_valid=N, has_perm=has_perm)

    in_specs = [
        pl.BlockSpec((TR, W), lambda c, b: (c * nbt + b, 0)),
        pl.BlockSpec((TR, W), lambda c, b: (c * nbt + b, 0)),
    ]
    operands = [P2, T2]
    if has_perm:
        lane = jnp.arange(W, dtype=jnp.int32)
        src = (lane // V) * V + shuffle[lane % V]      # pred lane feeding output lane l
        perm = (jnp.arange(W, dtype=jnp.int32)[:, None] == src[None, :]).astype(jnp.float32)
        in_specs.append(pl.BlockSpec((W, W), lambda c, b: (0, 0)))
        operands.append(perm)

    bytes_per_elt = pred.dtype.itemsize + target.dtype.itemsize
    cost = pl.CostEstimate(
        flops=int(N_pad) * ((2 * W) if has_perm else 0) + 10 * int(N_pad),
        transcendentals=2 * int(N_pad),
        bytes_accessed=int(N_pad) * int(bytes_per_elt) + 2 * NC * 8 * W * 4,
    )

    mse_acc, bce_acc = pl.pallas_call(
        kernel,
        out_shape=(jax.ShapeDtypeStruct((NC, 8, W), jnp.float32),
                   jax.ShapeDtypeStruct((NC, 8, W), jnp.float32)),
        grid_spec=pltpu.PrefetchScalarGridSpec(
            num_scalar_prefetch=0,
            grid=(NC, nbt),
            in_specs=in_specs,
            out_specs=(
                pl.BlockSpec((None, 8, W), lambda c, b: (c, 0, 0)),
                pl.BlockSpec((None, 8, W), lambda c, b: (c, 0, 0)),
            ),
        ),
        compiler_params=pltpu.CompilerParams(
            dimension_semantics=("parallel", "arbitrary"),
            vmem_limit_bytes=32 * 1024 * 1024),
        cost_estimate=cost,
    )(*operands)

    # ---- tiny host epilogue on [W]- and [V]-length vectors ----
    mse_lane = jnp.sum(mse_acc, axis=(0, 1))                    # [W]
    bce_lane = jnp.sum(bce_acc, axis=(0, 1))                    # [W]
    mse_j = jnp.sum(mse_lane.reshape(W // V, V), axis=0) / B    # per target column j
    bce_j = jnp.sum(bce_lane.reshape(W // V, V), axis=0) / B
    # loss of original-ordering variable i pairs pred[:, shuffle[shuffle[i]]] with
    # target[:, shuffle[i]]  =>  it is the per-column-j result at j = shuffle[i].
    mse_i = mse_j[shuffle]
    bce_i = bce_j[shuffle]

    typ = jnp.array([1.0 if var_types[n] == 'bin' else 0.0
                     for n in orig_var_name_ordering], dtype=jnp.float32)
    act = jnp.array([1.0 if causal_ordering[n] != 0 else 0.0
                     for n in orig_var_name_ordering], dtype=jnp.float32)

    per_var = jnp.where(typ > 0.5, bce_i, mse_i)
    total_loss = jnp.sum(per_var * act)
    loss_tracking = {
        name: per_var[i]
        for i, name in enumerate(orig_var_name_ordering)
        if causal_ordering[name] != 0
    }
    return total_loss, loss_tracking


def _numpy_reference(pred, target, shuffle, var_types, orig_order, causal_ordering):
    pred = np.asarray(pred, np.float64)
    target = np.asarray(target, np.float64)
    shuffle = np.asarray(shuffle)
    pred_sh = pred[:, shuffle]
    target_sh = target[:, shuffle]
    total = 0.0
    tracking = {}
    for i, name in enumerate(orig_order):
        if causal_ordering[name] != 0:
            idx = shuffle[i]
            x = pred_sh[:, idx]
            t = target_sh[:, i]
            if var_types[name] == 'cont':
                loss = np.mean((x - t) ** 2)
            else:  # bin, BCEWithLogits
                loss = np.mean(np.maximum(x, 0.0) - x * t + np.log1p(np.exp(-np.abs(x))))
            tracking[name] = loss
            total += loss
    return total, tracking


if __name__ == "__main__":
    V = 8
    orig_var_name_ordering = [f"v{i}" for i in range(V)]
    var_types = {f"v{i}": ('bin' if i % 2 == 1 else 'cont') for i in range(V)}
    # causal_ordering == 0 means "exclude from loss"; exclude v0 and v5.
    causal_ordering = {f"v{i}": (0 if i in (0, 5) else i) for i in range(V)}
    is_bin = np.array([1.0 if var_types[n] == 'bin' else 0.0
                       for n in orig_var_name_ordering], dtype=np.float32)

    def make_inputs(key, B):
        k1, k2, k3, k4 = jax.random.split(key, 4)
        pred = jax.random.normal(k1, (B, V), dtype=jnp.float32)
        cont_t = jax.random.normal(k2, (B, V), dtype=jnp.float32)
        bin_t = jax.random.bernoulli(k3, 0.5, (B, V)).astype(jnp.float32)
        target = jnp.where(jnp.asarray(is_bin)[None, :] > 0.5, bin_t, cont_t)
        shuffle = jax.random.permutation(k4, V).astype(jnp.int32)
        return pred, target, shuffle

    # Case 1: tiny (B=8) -- single padded tile, boundary masking path.
    pred, target, shuf = make_inputs(jax.random.PRNGKey(0), 8)
    total, tracking = mixed_loss_pallas(pred, target, shuf, var_types,
                                        orig_var_name_ordering, causal_ordering)
    total = jax.block_until_ready(total)
    ref_total, ref_tracking = _numpy_reference(
        np.array(pred), np.array(target), np.array(shuf),
        var_types, orig_var_name_ordering, causal_ordering)
    assert np.allclose(float(total), ref_total, rtol=1e-5, atol=1e-5), \
        (float(total), ref_total)
    for name, v in ref_tracking.items():
        assert np.allclose(float(tracking[name]), v, rtol=1e-5, atol=1e-5), \
            (name, float(tracking[name]), v)

    # Case 2: B=300 with tiny forced tiles + NC=2 -- exercises multi-tile
    # accumulation, steady-state (unmasked) tiles, the boundary-masked tile and a
    # fully-padded tile.  Correct on any chip (the extra axis just serializes on 1-TC).
    pred2, target2, shuf2 = make_inputs(jax.random.PRNGKey(1), 300)
    total2, tracking2 = mixed_loss_pallas(pred2, target2, shuf2, var_types,
                                          orig_var_name_ordering, causal_ordering,
                                          max_tile_rows=8, num_parallel=2)
    total2 = jax.block_until_ready(total2)
    ref_total2, ref_tracking2 = _numpy_reference(
        np.array(pred2), np.array(target2), np.array(shuf2),
        var_types, orig_var_name_ordering, causal_ordering)
    assert np.allclose(float(total2), ref_total2, rtol=1e-4, atol=1e-5), \
        (float(total2), ref_total2)
    for name, v in ref_tracking2.items():
        assert np.allclose(float(tracking2[name]), v, rtol=1e-4, atol=1e-5), \
            (name, float(tracking2[name]), v)

    print("KERNEL_OK")
</pallas_src>

<mosaic_0001>
module attributes {stable_mosaic.version = 11 : i64} {
  func.func @_mixed_loss_kernel(%arg0: i32, %arg1: i32, %arg2: memref<8x128xf32, #tpu.memory_space<vmem>>, %arg3: memref<8x128xf32, #tpu.memory_space<vmem>>, %arg4: memref<128x128xf32, #tpu.memory_space<vmem>>, %arg5: memref<1x8x128xf32, #tpu.memory_space<vmem>>, %arg6: memref<1x8x128xf32, #tpu.memory_space<vmem>>) attributes {dimension_semantics = [#tpu.dimension_semantics<parallel>, #tpu.dimension_semantics<arbitrary>], iteration_bounds = array<i64: 1, 1>, scalar_prefetch = 0 : i64, scratch_operands = 0 : i64, tpu.core_type = #tpu.core_type<tc>, window_params = [{transform_indices = @transform_0, window_bounds = array<i64: 8, 128>}, {transform_indices = @transform_1, window_bounds = array<i64: 8, 128>}, {pipeline_mode = #tpu.pipeline_mode<synchronous>, transform_indices = @transform_2, window_bounds = array<i64: 128, 128>}, {transform_indices = @transform_3, window_bounds = array<i64: 1, 8, 128>}, {transform_indices = @transform_4, window_bounds = array<i64: 1, 8, 128>}]} {
    %c0_i32 = arith.constant 0 : i32
    %0 = arith.cmpi eq, %arg1, %c0_i32 : i32
    %1 = arith.extui %0 : i1 to i32
    %c0_i32_0 = arith.constant 0 : i32
    %2 = arith.cmpi ne, %1, %c0_i32_0 : i32
    scf.if %2 {
      %cst_19 = arith.constant 0.000000e+00 : f32
      %38 = vector.broadcast %cst_19 : f32 to vector<8x128xf32>
      %c0_20 = arith.constant 0 : index
      %c0_21 = arith.constant 0 : index
      %c0_22 = arith.constant 0 : index
      %39 = vector.load %arg5[%c0_20, %c0_21, %c0_22] : memref<1x8x128xf32, #tpu.memory_space<vmem>>, vector<1x8x128xf32>
      %40 = vector.shape_cast %39 : vector<1x8x128xf32> to vector<8x128xf32>
      %41 = vector.shape_cast %38 : vector<8x128xf32> to vector<1x8x128xf32>
      tpu.vector_store %arg5[%c0_20, %c0_21, %c0_22], %41 {strides = array<i32>} : memref<1x8x128xf32, #tpu.memory_space<vmem>>, vector<1x8x128xf32>,
      %cst_23 = arith.constant 0.000000e+00 : f32
      %42 = vector.broadcast %cst_23 : f32 to vector<8x128xf32>
      %c0_24 = arith.constant 0 : index
      %c0_25 = arith.constant 0 : index
      %c0_26 = arith.constant 0 : index
      %43 = vector.load %arg6[%c0_24, %c0_25, %c0_26] : memref<1x8x128xf32, #tpu.memory_space<vmem>>, vector<1x8x128xf32>
      %44 = vector.shape_cast %43 : vector<1x8x128xf32> to vector<8x128xf32>
      %45 = vector.shape_cast %42 : vector<8x128xf32> to vector<1x8x128xf32>
      tpu.vector_store %arg6[%c0_24, %c0_25, %c0_26], %45 {strides = array<i32>} : memref<1x8x128xf32, #tpu.memory_space<vmem>>, vector<1x8x128xf32>,
    } else {
    }
    %c0 = arith.constant 0 : index
    %c0_1 = arith.constant 0 : index
    %3 = vector.load %arg2[%c0, %c0_1] : memref<8x128xf32, #tpu.memory_space<vmem>>, vector<8x128xf32>
    %c0_2 = arith.constant 0 : index
    %c0_3 = arith.constant 0 : index
    %4 = vector.load %arg3[%c0_2, %c0_3] : memref<8x128xf32, #tpu.memory_space<vmem>>, vector<8x128xf32>
    %c0_4 = arith.constant 0 : index
    %c0_5 = arith.constant 0 : index
    %5 = vector.load %arg4[%c0_4, %c0_5] : memref<128x128xf32, #tpu.memory_space<vmem>>, vector<128x128xf32>
    %cst = arith.constant dense<0.000000e+00> : vector<8x128xf32>
    %6 = tpu.matmul %3, %5, %cst {dimension_numbers = #tpu.dot_dimension_numbers<[1], [0], [0], [1], [0, 0, 1, 1], [], []>, precision = #tpu.contract_precision<fp32>} : vector<8x128xf32>, vector<128x128xf32>, vector<8x128xf32> -> vector<8x128xf32>
    %7 = arith.subf %6, %4 : vector<8x128xf32>
    %c0_6 = arith.constant 0 : index
    %c0_7 = arith.constant 0 : index
    %c0_8 = arith.constant 0 : index
    %8 = vector.load %arg5[%c0_6, %c0_7, %c0_8] : memref<1x8x128xf32, #tpu.memory_space<vmem>>, vector<1x8x128xf32>
    %9 = vector.shape_cast %8 : vector<1x8x128xf32> to vector<8x128xf32>
    %10 = arith.mulf %7, %7 : vector<8x128xf32>
    %11 = vector.shape_cast %10 : vector<8x128xf32> to vector<1x8x128xf32>
    %cst_9 = arith.constant dense<0.000000e+00> : vector<8x128xf32>
    %12 = vector.multi_reduction <add>, %11, %cst_9 [0] : vector<1x8x128xf32> to vector<8x128xf32>
    %13 = arith.addf %9, %12 : vector<8x128xf32>
    %c0_10 = arith.constant 0 : index
    %c0_11 = arith.constant 0 : index
    %c0_12 = arith.constant 0 : index
    %14 = vector.load %arg5[%c0_10, %c0_11, %c0_12] : memref<1x8x128xf32, #tpu.memory_space<vmem>>, vector<1x8x128xf32>
    %15 = vector.shape_cast %14 : vector<1x8x128xf32> to vector<8x128xf32>
    %16 = vector.shape_cast %13 : vector<8x128xf32> to vector<1x8x128xf32>
    tpu.vector_store %arg5[%c0_10, %c0_11, %c0_12], %16 {strides = array<i32>} : memref<1x8x128xf32, #tpu.memory_space<vmem>>, vector<1x8x128xf32>,
    %cst_13 = arith.constant 0.000000e+00 : f32
    %17 = vector.broadcast %cst_13 : f32 to vector<8x128xf32>
    %18 = arith.maximumf %6, %17 : vector<8x128xf32>
    %19 = arith.mulf %6, %4 : vector<8x128xf32>
    %20 = arith.subf %18, %19 : vector<8x128xf32>
    %21 = math.absf %6 : vector<8x128xf32>
    %cst_14 = arith.constant 0.000000e+00 : f32
    %22 = vector.broadcast %cst_14 : f32 to vector<8x128xf32>
    %23 = arith.subf %22, %21 : vector<8x128xf32>
    %24 = math.exp %23 : vector<8x128xf32>
    %25 = math.log1p %24 : vector<8x128xf32>
    %26 = arith.addf %20, %25 : vector<8x128xf32>
    %c1_i32 = arith.constant 1 : i32
    %27 = arith.muli %arg0, %c1_i32 : i32
    %28 = arith.addi %27, %arg1 : i32
    %c8_i32 = arith.constant 8 : i32
    %29 = arith.muli %28, %c8_i32 : i32
    %c8_i32_15 = arith.constant 8 : i32
    %30 = arith.addi %29, %c8_i32_15 : i32
    %c128_i32 = arith.constant 128 : i32
    %31 = arith.muli %30, %c128_i32 : i32
    %c64_i32 = arith.constant 64 : i32
    %32 = arith.cmpi sle, %31, %c64_i32 : i32
    %33 = arith.extui %32 : i1 to i32
    %c0_i32_16 = arith.constant 0 : i32
    %34 = arith.cmpi ne, %33, %c0_i32_16 : i32
    scf.if %34 {
      %c0_19 = arith.constant 0 : index
      %c0_20 = arith.constant 0 : index
      %c0_21 = arith.constant 0 : index
      %38 = vector.load %arg6[%c0_19, %c0_20, %c0_21] : memref<1x8x128xf32, #tpu.memory_space<vmem>>, vector<1x8x128xf32>
      %39 = vector.shape_cast %38 : vector<1x8x128xf32> to vector<8x128xf32>
      %40 = vector.shape_cast %26 : vector<8x128xf32> to vector<1x8x128xf32>
      %cst_22 = arith.constant dense<0.000000e+00> : vector<8x128xf32>
      %41 = vector.multi_reduction <add>, %40, %cst_22 [0] : vector<1x8x128xf32> to vector<8x128xf32>
      %42 = arith.addf %39, %41 : vector<8x128xf32>
      %c0_23 = arith.constant 0 : index
      %c0_24 = arith.constant 0 : index
      %c0_25 = arith.constant 0 : index
      %43 = vector.load %arg6[%c0_23, %c0_24, %c0_25] : memref<1x8x128xf32, #tpu.memory_space<vmem>>, vector<1x8x128xf32>
      %44 = vector.shape_cast %43 : vector<1x8x128xf32> to vector<8x128xf32>
      %45 = vector.shape_cast %42 : vector<8x128xf32> to vector<1x8x128xf32>
      tpu.vector_store %arg6[%c0_23, %c0_24, %c0_25], %45 {strides = array<i32>} : memref<1x8x128xf32, #tpu.memory_space<vmem>>, vector<1x8x128xf32>,
    } else {
    }
    %c64_i32_17 = arith.constant 64 : i32
    %35 = arith.cmpi sgt, %31, %c64_i32_17 : i32
    %36 = arith.extui %35 : i1 to i32
    %c0_i32_18 = arith.constant 0 : i32
    %37 = arith.cmpi ne, %36, %c0_i32_18 : i32
    scf.if %37 {
      %38 = tpu.iota {dimensions = array<i32: 0>} : vector<8x128xi32>
      %39 = tpu.iota {dimensions = array<i32: 1>} : vector<8x128xi32>
      %40 = vector.broadcast %29 : i32 to vector<8x128xi32>
      %41 = arith.addi %40, %38 : vector<8x128xi32>
      %c128_i32_19 = arith.constant 128 : i32
      %42 = vector.broadcast %c128_i32_19 : i32 to vector<8x128xi32>
      %43 = arith.muli %41, %42 : vector<8x128xi32>
      %44 = arith.addi %43, %39 : vector<8x128xi32>
      %c64_i32_20 = arith.constant 64 : i32
      %45 = vector.broadcast %c64_i32_20 : i32 to vector<8x128xi32>
      %46 = arith.cmpi slt, %44, %45 : vector<8x128xi32>
      %cst_21 = arith.constant 0.000000e+00 : f32
      %47 = vector.broadcast %cst_21 : f32 to vector<8x128xf32>
      %48 = arith.select %46, %26, %47 : vector<8x128xi1>, vector<8x128xf32>
      %c0_22 = arith.constant 0 : index
      %c0_23 = arith.constant 0 : index
      %c0_24 = arith.constant 0 : index
      %49 = vector.load %arg6[%c0_22, %c0_23, %c0_24] : memref<1x8x128xf32, #tpu.memory_space<vmem>>, vector<1x8x128xf32>
      %50 = vector.shape_cast %49 : vector<1x8x128xf32> to vector<8x128xf32>
      %51 = vector.shape_cast %48 : vector<8x128xf32> to vector<1x8x128xf32>
      %cst_25 = arith.constant dense<0.000000e+00> : vector<8x128xf32>
      %52 = vector.multi_reduction <add>, %51, %cst_25 [0] : vector<1x8x128xf32> to vector<8x128xf32>
      %53 = arith.addf %50, %52 : vector<8x128xf32>
      %c0_26 = arith.constant 0 : index
      %c0_27 = arith.constant 0 : index
      %c0_28 = arith.constant 0 : index
      %54 = vector.load %arg6[%c0_26, %c0_27, %c0_28] : memref<1x8x128xf32, #tpu.memory_space<vmem>>, vector<1x8x128xf32>
      %55 = vector.shape_cast %54 : vector<1x8x128xf32> to vector<8x128xf32>
      %56 = vector.shape_cast %53 : vector<8x128xf32> to vector<1x8x128xf32>
      tpu.vector_store %arg6[%c0_26, %c0_27, %c0_28], %56 {strides = array<i32>} : memref<1x8x128xf32, #tpu.memory_space<vmem>>, vector<1x8x128xf32>,
    } else {
    }
    return
  }
  func.func @transform_0(%arg0: i32, %arg1: i32) -> (i32, i32) {
    %c1_i32 = arith.constant 1 : i32
    %0 = arith.muli %arg0, %c1_i32 : i32
    %1 = arith.addi %0, %arg1 : i32
    %c0_i32 = arith.constant 0 : i32
    %c0_i32_0 = arith.constant 0 : i32
    return %1, %c0_i32 : i32, i32
  }
  func.func @transform_1(%arg0: i32, %arg1: i32) -> (i32, i32) {
    %c1_i32 = arith.constant 1 : i32
    %0 = arith.muli %arg0, %c1_i32 : i32
    %1 = arith.addi %0, %arg1 : i32
    %c0_i32 = arith.constant 0 : i32
    %c0_i32_0 = arith.constant 0 : i32
    return %1, %c0_i32 : i32, i32
  }
  func.func @transform_2(%arg0: i32, %arg1: i32) -> (i32, i32) {
    %c0_i32 = arith.constant 0 : i32
    %c0_i32_0 = arith.constant 0 : i32
    %c0_i32_1 = arith.constant 0 : i32
    return %c0_i32, %c0_i32_0 : i32, i32
  }
  func.func @transform_3(%arg0: i32, %arg1: i32) -> (i32, i32, i32) {
    %c0_i32 = arith.constant 0 : i32
    %c0_i32_0 = arith.constant 0 : i32
    %c0_i32_1 = arith.constant 0 : i32
    return %arg0, %c0_i32, %c0_i32_0 : i32, i32, i32
  }
  func.func @transform_4(%arg0: i32, %arg1: i32) -> (i32, i32, i32) {
    %c0_i32 = arith.constant 0 : i32
    %c0_i32_0 = arith.constant 0 : i32
    %c0_i32_1 = arith.constant 0 : i32
    return %arg0, %c0_i32, %c0_i32_0 : i32, i32, i32
  }
}

</mosaic_0001>

<bundles_post_ra>
// kernel: tpu_custom_call.1
= control target key start
LH: loop header
LB: loop body
LE: loop exit
PB: predicated region body
PF: predicated region fallthrough
CT: control target
= control target key end

     0   :  { %10 = vsyncpa [#allocation3], 0  ;;  %s1750_s0 = inlined_call_operand.hbm [shape: f32[8,128], index: 0, kind: input, shape index: {}]   ;;  %s1751_s1 = inlined_call_operand.hbm [shape: f32[8,128], index: 1, kind: input, shape index: {}]   ;;  %s1752_s2 = inlined_call_operand.hbm [shape: f32[128,128], index: 2, kind: input, shape index: {}]   ;;  %s1753_s3 = inlined_call_operand.hbm [shape: f32[1,8,128], index: 3, kind: output, shape index: {0}]   ;;  %s1754_s4 = inlined_call_operand.hbm [shape: f32[1,8,128], index: 4, kind: output, shape index: {1}]  }
   0x1   :  { %11 = vsyncpa [#allocation6], 0 }
   0x2   :  { %12 = vsyncpa [#allocation4], 0 }
   0x3   :  { %13 = vsyncpa [#allocation10], 0  ;;  %s1408_s15 = smov [#allocation5]   ;;  %s1409_s17 = smov [#allocation2]  }
   0x4   :  { %s36_s16 = sshll.u32 %s1408_s15, 4  ;;  %s23_s18 = sshll.u32 %s1409_s17, 4  ;;  %s37_s16 = int_to_ptr.vmem [resolvable:$true] %s36_s16  ;;  %s24_s18 = int_to_ptr.vmem [resolvable:$true] %s23_s18 }
   0x5   :  { %s1290_s21 = scalar_lea.hbm %s1751_s1, 128 }
   0x6   :  { %p1291_p0 = scmp.ne.s32.totalorder %s1751_s1, %s1290_s21  ;;  %p1294_p1 = scmp.lt.u32.totalorder %s1290_s21, %s1751_s1 }
   0x8   :  { %p1296_p2 = pnand %p1294_p1, %p1291_p0 }
   0xa   :  { %1299 = shalt.err (!%p1296_p2)
}
   0xb   :  { %s1300_s26 = scalar_lea.vmem %s37_s16, 128  ;;  %p1305_p4 = scmp.lt.s32.totalorder %s37_s16, %s37_s16 }
   0xc   :  { %p1301_p3 = scmp.ne.s32.totalorder %s37_s16, %s1300_s26  ;;  %p1306_p5 = scmp.lt.s32.totalorder %s1300_s26, %s1300_s26 }
   0xe   :  { %p1307_p6 = por %p1306_p5, %p1305_p4 }
  0x10   :  { %p1308_p7 = pnand %p1307_p6, %p1301_p3 }
  0x12   :  { %1311 = shalt.err (!%p1308_p7)
}
  0x13   :  { %39 = dma.hbm_to_vmem [thread:$0]  %s1751_s1, 128, %s37_s16, [#allocation6]  }
  0x14   :  { %s1312_s5 = scalar_lea.hbm %s1750_s0, 128 }
  0x15   :  { %p1313_p8 = scmp.ne.s32.totalorder %s1750_s0, %s1312_s5  ;;  %p1316_p9 = scmp.lt.u32.totalorder %s1312_s5, %s1750_s0 }
  0x17   :  { %p1318_p10 = pnand %p1316_p9, %p1313_p8 }
  0x19   :  { %1321 = shalt.err (!%p1318_p10)
}
  0x1a   :  { %s1322_s10 = scalar_lea.vmem %s24_s18, 128  ;;  %p1327_p12 = scmp.lt.s32.totalorder %s24_s18, %s24_s18 }
  0x1b   :  { %p1323_p11 = scmp.ne.s32.totalorder %s24_s18, %s1322_s10  ;;  %p1328_p13 = scmp.lt.s32.totalorder %s1322_s10, %s1322_s10 }
  0x1d   :  { %p1329_p0 = por %p1328_p13, %p1327_p12 }
  0x1f   :  { %p1330_p1 = pnand %p1329_p0, %p1323_p11 }
  0x21   :  { %1333 = shalt.err (!%p1330_p1)
}
  0x22   :  { %26 = dma.hbm_to_vmem [thread:$0]  %s1750_s0, 128, %s24_s18, [#allocation3]  }
  0x23   :  { %s1410_s12 = smov [#allocation7]   ;;  %s1334_s16 = scalar_lea.hbm %s1752_s2, 2048 }
  0x24   :  { %s45_s13 = sshll.u32 %s1410_s12, 4  ;;  %p1335_p2 = scmp.ne.s32.totalorder %s1752_s2, %s1334_s16  ;;  %s46_s13 = int_to_ptr.vmem [resolvable:$true] %s45_s13 }
  0x25   :  { %p1338_p3 = scmp.lt.u32.totalorder %s1334_s16, %s1752_s2 }
  0x27   :  { %p1340_p4 = pnand %p1338_p3, %p1335_p2 }
  0x29   :  { %1343 = shalt.err (!%p1340_p4)
}
  0x2a   :  { %s1344_s22 = scalar_lea.vmem %s46_s13, 2048  ;;  %p1349_p6 = scmp.lt.s32.totalorder %s46_s13, %s46_s13 }
  0x2b   :  { %p1345_p5 = scmp.ne.s32.totalorder %s46_s13, %s1344_s22  ;;  %p1350_p7 = scmp.lt.s32.totalorder %s1344_s22, %s1344_s22 }
  0x2d   :  { %p1351_p8 = por %p1350_p7, %p1349_p6 }
  0x2f   :  { %p1352_p9 = pnand %p1351_p8, %p1345_p5 }
  0x31   :  { %1355 = shalt.err (!%p1352_p9)
}
  0x32   :  { %s1411_s0 = smov 128   ;;  %s1412_s18 = smov 8  }
  0x33   :  { %51 = dma.hbm_to_vmem [thread:$0]  %s1752_s2, 2048, %s46_s13, [#allocation6], %s1411_s0, %s1411_s0, %s1412_s18  }
  0x34   :  { %1400 = dma.done.wait [#allocation3], 128  }
  0x35   :  { %1401 = vsyncadd [#allocation3], 4294967168 }
  0x36   :  { %1402 = dma.done.wait [#allocation6], 2176  }
  0x37   :  { %1403 = vsyncadd [#allocation6], 4294965120  ;;  %v1413_v0 = vmov 0.0|0.0   ;;  %vm1414_vm0 = vmmov 0   ;;  %v1415_v1 = vmov 0.0   ;;  %v71_v2 = vld [vmem:[#allocation7] sm:$0xff] }
  0x38   :  { %1123 = vmatprep.subr.bf16.mxu1 %v1413_v0  ;;  %1195 = vmatprep.subr.bf16.mxu0 %v1413_v0  ;;  %v72_v3 = vld [vmem:[#allocation7 + $0x8] sm:$0xff]  ;;  %v73_v4 = vld [vmem:[#allocation7 + $0x10] sm:$0xff]  ;;  %v88_v5 = vand.u32 4294901760, %v71_v2  ;;  %v74_v7 = vld [vmem:[#allocation7 + $0x18] sm:$0xff]  ;;  %s1416_s2 = smov [#allocation8]  }
  0x39   :  { %945 = vmatprep.mubr.msk.f32.mxu1 %vm1414_vm0, %v1415_v1  ;;  %1050 = vmatprep.mubr.msk.f32.mxu0 %vm1414_vm0, %v1415_v1  ;;  %v91_v6 = vand.u32 4294901760, %v72_v3  ;;  %v94_v8 = vand.u32 4294901760, %v73_v4  ;;  %v97_v9 = vand.u32 4294901760, %v74_v7  ;;  %v75_v10 = vld [vmem:[#allocation7 + $0x20] sm:$0xff]  ;;  %v76_v11 = vld [vmem:[#allocation7 + $0x28] sm:$0xff]  ;;  %v77_v16 = vld [vmem:[#allocation7 + $0x30] sm:$0xff] }
  0x3a   :  { %v100_v14 = vand.u32 4294901760, %v75_v10  ;;  %v103_v15 = vand.u32 4294901760, %v76_v11  ;;  %v78_v17 = vld [vmem:[#allocation7 + $0x38] sm:$0xff]  ;;  %v106_v19 = vand.u32 4294901760, %v77_v16  ;;  %v1499_v21 = vld [vmem:[#allocation7 + $0x40] sm:$0xff]  ;;  %v1501_v22 = vld [vmem:[#allocation7 + $0x48] sm:$0xff]  ;;  %v1515_v29 = vsub.f32 %v71_v2, %v88_v5 }
  0x3b   :  { %v1485_v12 = vpack.c.bf16 %v91_v6, %v88_v5  ;;  %v1489_v13 = vpack.c.bf16 %v97_v9, %v94_v8  ;;  %v109_v20 = vand.u32 4294901760, %v78_v17  ;;  %v112_v24 = vand.u32 4294901760, %v1499_v21  ;;  %v69_v26 = vld [vmem:[#allocation2] sm:$0xff]  ;;  %v1513_v28 = vld [vmem:[#allocation7 + $0x58] sm:$0xff]  ;;  %v1527_v35 = vld [vmem:[#allocation7 + $0x60] sm:$0xff]  ;;  %s787_s25 = sshll.u32 %s1416_s2, 4  ;;  %s788_s25 = int_to_ptr.vmem [resolvable:$true] %s787_s25 }
  0x3c   :  { %v1495_v18 = vpack.c.bf16 %v103_v15, %v100_v14  ;;  %v115_v25 = vand.u32 4294901760, %v1501_v22  ;;  %v1511_v27 = vld [vmem:[#allocation7 + $0x50] sm:$0xff]  ;;  %v1517_v30 = vand.u32 4294901760, %v69_v26  ;;  %v1519_v31 = vsub.f32 %v72_v3, %v91_v6  ;;  %v1531_v36 = vld [vmem:[#allocation7 + $0x68] sm:$0xff]  ;;  %v1552_v44 = vld [vmem:[#allocation7 + $0x78] sm:$0xff]  ;;  %s1356_s26 = scalar_lea.vmem %s788_s25, 128  ;;  %p1361_p11 = scmp.lt.s32.totalorder %s788_s25, %s788_s25 }
  0x3d   :  { %1125 = vmatpush3.bf16.msra.mxu1 %v1485_v12  ;;  %1197 = vmatpush3.bf16.msra.mxu0 %v1485_v12  ;;  %v1505_v23 = vpack.c.bf16 %v109_v20, %v106_v19  ;;  %v118_v33 = vand.u32 4294901760, %v1511_v27  ;;  %v121_v34 = vand.u32 4294901760, %v1513_v28  ;;  %v1533_v37 = vsub.f32 %v73_v4, %v94_v8  ;;  %v1550_v43 = vld [vmem:[#allocation7 + $0x70] sm:$0xff]  ;;  %p1357_p10 = scmp.ne.s32.totalorder %s788_s25, %s1356_s26  ;;  %p1362_p12 = scmp.lt.s32.totalorder %s1356_s26, %s1356_s26 }
  0x3e   :  { %1126 = vmatprep.subr.bf16.mxu1 %v1413_v0  ;;  %1198 = vmatprep.subr.bf16.mxu0 %v1413_v0  ;;  %v1523_v32 = vpack.c.bf16 %v115_v25, %v112_v24  ;;  %v1535_v38 = vsub.f32 %v74_v7, %v97_v9  ;;  %v124_v39 = vand.u32 4294901760, %v1527_v35  ;;  %v1539_v40 = vsub.f32 %v69_v26, %v1517_v30 }
  0x3f   :  { %v1547_v41 = vpack.c.bf16 %v121_v34, %v118_v33  ;;  %v127_v42 = vand.u32 4294901760, %v1531_v36  ;;  %v181_v45 = vand.u32 4294901760, %v1515_v29  ;;  %v188_v46 = vand.u32 4294901760, %v1519_v31  ;;  %p1363_p13 = por %p1362_p12, %p1361_p11 }
  0x40   :  { %v1558_v47 = vsub.f32 %v75_v10, %v100_v14  ;;  %v1560_v48 = vsub.f32 %v76_v11, %v103_v15  ;;  %v130_v49 = vand.u32 4294901760, %v1550_v43  ;;  %v133_v50 = vand.u32 4294901760, %v1552_v44 }
  0x41   :  { %1128 = vmatpush3.bf16.msra.mxu1 %v1489_v13  ;;  %1200 = vmatpush3.bf16.msra.mxu0 %v1489_v13  ;;  %v170_v51 = vand.u32 4294901760, %v1539_v40  ;;  %v195_v52 = vand.u32 4294901760, %v1533_v37  ;;  %v1572_v53 = vpack.c.bf16 %v127_v42, %v124_v39  ;;  %v182_v54 = vsub.f32 %v1515_v29, %v181_v45  ;;  %p1364_p0 = pnand %p1363_p13, %p1357_p10 }
  0x42   :  { %1129 = vmatprep.subr.bf16.mxu1 %v1413_v0  ;;  %1201 = vmatprep.subr.bf16.mxu0 %v1413_v0  ;;  %v189_v55 = vsub.f32 %v1519_v31, %v188_v46  ;;  %v202_v56 = vand.u32 4294901760, %v1535_v38  ;;  %v1579_v57 = vsub.f32 %v77_v16, %v106_v19  ;;  %v1581_v58 = vsub.f32 %v78_v17, %v109_v20 }
  0x43   :  { %v171_v59 = vsub.f32 %v1539_v40, %v170_v51  ;;  %v196_v60 = vsub.f32 %v1533_v37, %v195_v52  ;;  %v209_v61 = vand.u32 4294901760, %v1558_v47  ;;  %v216_v62 = vand.u32 4294901760, %v1560_v48 }
  0x44   :  { %v1593_v63 = vpack.c.bf16 %v133_v50, %v130_v49  ;;  %v183_v2 = vand.u32 4294901760, %v182_v54  ;;  %v190_v3 = vand.u32 4294901760, %v189_v55  ;;  %v203_v4 = vsub.f32 %v1535_v38, %v202_v56 }
  0x45   :  { %1131 = vmatpush3.bf16.msra.mxu1 %v1495_v18  ;;  %1203 = vmatpush3.bf16.msra.mxu0 %v1495_v18  ;;  %v1599_v5 = vsub.f32 %v1499_v21, %v112_v24  ;;  %v1602_v6 = vsub.f32 %v1501_v22, %v115_v25  ;;  %v1220_v7 = vpack.c.bf16 %v188_v46, %v181_v45  ;;  %v172_v8 = vand.u32 4294901760, %v171_v59 }
  0x46   :  { %1132 = vmatprep.subr.bf16.mxu1 %v1413_v0  ;;  %1204 = vmatprep.subr.bf16.mxu0 %v1413_v0  ;;  %v197_v9 = vand.u32 4294901760, %v196_v60  ;;  %v210_v10 = vsub.f32 %v1558_v47, %v209_v61  ;;  %v217_v11 = vsub.f32 %v1560_v48, %v216_v62  ;;  %v1148_v14 = vpack.c.bf16 %v190_v3, %v183_v2 }
  0x47   :  { %v204_v15 = vand.u32 4294901760, %v203_v4  ;;  %v223_v16 = vand.u32 4294901760, %v1579_v57  ;;  %v230_v17 = vand.u32 4294901760, %v1581_v58  ;;  %v1615_v19 = vsub.f32 %v1511_v27, %v118_v33 }
  0x48   :  { %v1620_v20 = vsub.f32 %v1513_v28, %v121_v34  ;;  %v1223_v21 = vpack.c.bf16 %v202_v56, %v195_v52  ;;  %v211_v22 = vand.u32 4294901760, %v210_v10  ;;  %v218_v24 = vand.u32 4294901760, %v217_v11 }
  0x49   :  { %1134 = vmatpush3.bf16.msra.mxu1 %v1505_v23  ;;  %1206 = vmatpush3.bf16.msra.mxu0 %v1505_v23  ;;  %v237_v25 = vand.u32 4294901760, %v1599_v5  ;;  %v1151_v26 = vpack.c.bf16 %v204_v15, %v197_v9  ;;  %v224_v45 = vsub.f32 %v1579_v57, %v223_v16  ;;  %v231_v27 = vsub.f32 %v1581_v58, %v230_v17 }
  0x4a   :  { %1135 = vmatprep.subr.bf16.mxu1 %v1413_v0  ;;  %1207 = vmatprep.subr.bf16.mxu0 %v1413_v0  ;;  %v244_v33 = vand.u32 4294901760, %v1602_v6  ;;  %v1631_v28 = vsub.f32 %v1527_v35, %v124_v39  ;;  %v1636_v34 = vsub.f32 %v1531_v36, %v127_v42  ;;  %v1154_v46 = vpack.c.bf16 %v218_v24, %v211_v22 }
  0x4b   :  { %v238_v52 = vsub.f32 %v1599_v5, %v237_v25  ;;  %v251_v54 = vand.u32 4294901760, %v1615_v19  ;;  %v225_v35 = vand.u32 4294901760, %v224_v45  ;;  %v232_v39 = vand.u32 4294901760, %v231_v27 }
  0x4c   :  { %v245_v55 = vsub.f32 %v1602_v6, %v244_v33  ;;  %v258_v36 = vand.u32 4294901760, %v1620_v20  ;;  %v1651_v42 = vsub.f32 %v1550_v43, %v130_v49  ;;  %v1656_v56 = vsub.f32 %v1552_v44, %v133_v50 }
  0x4d   :  { %1137 = vmatpush3.bf16.msra.mxu1 %v1523_v32  ;;  %1209 = vmatpush3.bf16.msra.mxu0 %v1523_v32  ;;  %v1229_v59 = vpack.c.bf16 %v230_v17, %v223_v16  ;;  %v239_v60 = vand.u32 4294901760, %v238_v52  ;;  %v1157_v2 = vpack.c.bf16 %v232_v39, %v225_v35  ;;  %v272_v43 = vand.u32 4294901760, %v1636_v34 }
  0x4e   :  { %1138 = vmatprep.subr.bf16.mxu1 %v1413_v0  ;;  %1210 = vmatprep.subr.bf16.mxu0 %v1413_v0  ;;  %v246_v3 = vand.u32 4294901760, %v245_v55  ;;  %v259_v4 = vsub.f32 %v1620_v20, %v258_v36  ;;  %v1232_v44 = vpack.c.bf16 %v244_v33, %v237_v25  ;;  %v286_v11 = vand.u32 4294901760, %v1656_v56 }
  0x4f   :  { %v273_v10 = vsub.f32 %v1636_v34, %v272_v43 }
  0x50   :  { %v260_v9 = vand.u32 4294901760, %v259_v4  ;;  %v287_v22 = vsub.f32 %v1656_v56, %v286_v11 }
  0x51   :  { %1140 = vmatpush3.bf16.msra.mxu1 %v1547_v41  ;;  %1212 = vmatpush3.bf16.msra.mxu0 %v1547_v41  ;;  %v274_v17 = vand.u32 4294901760, %v273_v10 }
  0x52   :  { %1141 = vmatprep.subr.bf16.mxu1 %v1413_v0  ;;  %1213 = vmatprep.subr.bf16.mxu0 %v1413_v0  ;;  %v288_v45 = vand.u32 4294901760, %v287_v22 }
  0x55   :  { %1143 = vmatpush3.bf16.msra.mxu1 %v1572_v53  ;;  %1215 = vmatpush3.bf16.msra.mxu0 %v1572_v53 }
  0x56   :  { %1144 = vmatprep.subr.bf16.mxu1 %v1413_v0  ;;  %1216 = vmatprep.subr.bf16.mxu0 %v1413_v0 }
  0x59   :  { %1146 = vmatpush3.bf16.msra.mxu1 %v1593_v63  ;;  %1218 = vmatpush3.bf16.msra.mxu0 %v1593_v63 }
  0x5a   :  { %1147 = vmatprep.subr.bf16.mxu1 %v1413_v0  ;;  %1219 = vmatprep.subr.bf16.mxu0 %v1413_v0 }
  0x5c   :  { %946 = vmatmul.mubr.f32.vlgmr.msra.gmra.mrb[0].mxu1 %v172_v8  ;;  %1051 = vmatmul.mubr.f32.vlgmr.msra.gmra.mrb[0].mxu0 %v170_v51  ;;  %v1226_v51 = vpack.c.bf16 %v216_v62, %v209_v61  ;;  %v252_v61 = vsub.f32 %v1615_v19, %v251_v54  ;;  %v265_v62 = vand.u32 4294901760, %v1631_v28  ;;  %v1160_v8 = vpack.c.bf16 %v246_v3, %v239_v60 }
  0x5d   :  { %1149 = vmatpush3.bf16.msra.mxu1 %v1148_v14  ;;  %1221 = vmatpush3.bf16.msra.mxu0 %v1220_v7  ;;  %v279_v7 = vand.u32 4294901760, %v1651_v42  ;;  %v1235_v14 = vpack.c.bf16 %v258_v36, %v251_v54 }
  0x5e   :  { %1150 = vmatprep.subr.bf16.mxu1 %v1413_v0  ;;  %1222 = vmatprep.subr.bf16.mxu0 %v1413_v0  ;;  %v253_v49 = vand.u32 4294901760, %v252_v61  ;;  %v266_v50 = vsub.f32 %v1631_v28, %v265_v62  ;;  %v1238_v25 = vpack.c.bf16 %v272_v43, %v265_v62 }
  0x5f   :  { %980 = vmatprep.mubr.msk.f32.mxu1 %vm1414_vm0, %v1415_v1  ;;  %1085 = vmatprep.mubr.msk.f32.mxu0 %vm1414_vm0, %v1415_v1  ;;  %v1241_v33 = vpack.c.bf16 %v286_v11, %v279_v7 }
  0x60   :  { %v267_v15 = vand.u32 4294901760, %v266_v50  ;;  %v1163_v16 = vpack.c.bf16 %v260_v9, %v253_v49 }
  0x61   :  { %1152 = vmatpush3.bf16.msra.mxu1 %v1151_v26  ;;  %1224 = vmatpush3.bf16.msra.mxu0 %v1223_v21  ;;  %v280_v21 = vsub.f32 %v1651_v42, %v279_v7 }
  0x62   :  { %1153 = vmatprep.subr.bf16.mxu1 %v1413_v0  ;;  %1225 = vmatprep.subr.bf16.mxu0 %v1413_v0  ;;  %v1166_v24 = vpack.c.bf16 %v274_v17, %v267_v15 }
  0x63   :  { %v281_v26 = vand.u32 4294901760, %v280_v21 }
  0x65   :  { %1155 = vmatpush3.bf16.msra.mxu1 %v1154_v46  ;;  %1227 = vmatpush3.bf16.msra.mxu0 %v1226_v51  ;;  %v1169_v27 = vpack.c.bf16 %v288_v45, %v281_v26  ;;  %v1172_v46 = vpack.c.bf16 %v1519_v31, %v1515_v29  ;;  %v1175_v51 = vpack.c.bf16 %v1535_v38, %v1533_v37 }
  0x66   :  { %1156 = vmatprep.subr.bf16.mxu1 %v1413_v0  ;;  %1228 = vmatprep.subr.bf16.mxu0 %v1413_v0  ;;  %v1178_v29 = vpack.c.bf16 %v1560_v48, %v1558_v47 }
  0x69   :  { %1158 = vmatpush3.bf16.msra.mxu1 %v1157_v2  ;;  %1230 = vmatpush3.bf16.msra.mxu0 %v1229_v59 }
  0x6a   :  { %1159 = vmatprep.subr.bf16.mxu1 %v1413_v0  ;;  %1231 = vmatprep.subr.bf16.mxu0 %v1413_v0 }
  0x6d   :  { %1161 = vmatpush3.bf16.msra.mxu1 %v1160_v8  ;;  %1233 = vmatpush3.bf16.msra.mxu0 %v1232_v44 }
  0x6e   :  { %1162 = vmatprep.subr.bf16.mxu1 %v1413_v0  ;;  %1234 = vmatprep.subr.bf16.mxu0 %v1413_v0 }
  0x71   :  { %1164 = vmatpush3.bf16.msra.mxu1 %v1163_v16  ;;  %1236 = vmatpush3.bf16.msra.mxu0 %v1235_v14 }
  0x72   :  { %1165 = vmatprep.subr.bf16.mxu1 %v1413_v0  ;;  %1237 = vmatprep.subr.bf16.mxu0 %v1413_v0 }
  0x75   :  { %1167 = vmatpush3.bf16.msra.mxu1 %v1166_v24  ;;  %1239 = vmatpush3.bf16.msra.mxu0 %v1238_v25 }
  0x76   :  { %1168 = vmatprep.subr.bf16.mxu1 %v1413_v0  ;;  %1240 = vmatprep.subr.bf16.mxu0 %v1413_v0 }
  0x79   :  { %1170 = vmatpush3.bf16.msra.mxu1 %v1169_v27  ;;  %1242 = vmatpush3.bf16.msra.mxu0 %v1241_v33 }
  0x7a   :  { %1171 = vmatprep.subr.bf16.mxu1 %v1413_v0  ;;  %1243 = vmatprep.subr.bf16.mxu0 %v1413_v0 }
  0x7c   :  { %981 = vmatmul.mubr.f32.vlgmr.msra.gmra.mrb[0].mxu1 %v1517_v30  ;;  %1086 = vmatmul.mubr.f32.vlgmr.msra.gmra.mrb[0].mxu0 %v1517_v30 }
  0x7d   :  { %1173 = vmatpush3.bf16.msra.mxu1 %v1172_v46  ;;  %1245 = vmatpush3.bf16.msra.mxu0 %v1485_v12  ;;  %v1181_v12 = vpack.c.bf16 %v1581_v58, %v1579_v57 }
  0x7e   :  { %1174 = vmatprep.subr.bf16.mxu1 %v1413_v0  ;;  %1246 = vmatprep.subr.bf16.mxu0 %v1413_v0 }
  0x7f   :  { %1015 = vmatprep.mubr.msk.f32.mxu1 %vm1414_vm0, %v1415_v1  ;;  %1120 = vmatprep.mubr.msk.f32.mxu0 %vm1414_vm0, %v1415_v1  ;;  %v1184_v1 = vpack.c.bf16 %v1602_v6, %v1599_v5 }
  0x81   :  { %1176 = vmatpush3.bf16.msra.mxu1 %v1175_v51  ;;  %1248 = vmatpush3.bf16.msra.mxu0 %v1489_v13  ;;  %v1187_v13 = vpack.c.bf16 %v1620_v20, %v1615_v19 }
  0x82   :  { %1177 = vmatprep.subr.bf16.mxu1 %v1413_v0  ;;  %1249 = vmatprep.subr.bf16.mxu0 %v1413_v0 }
  0x85   :  { %1179 = vmatpush3.bf16.msra.mxu1 %v1178_v29  ;;  %1251 = vmatpush3.bf16.msra.mxu0 %v1495_v18  ;;  %v1190_v18 = vpack.c.bf16 %v1636_v34, %v1631_v28 }
  0x86   :  { %1180 = vmatprep.subr.bf16.mxu1 %v1413_v0  ;;  %1252 = vmatprep.subr.bf16.mxu0 %v1413_v0 }
  0x89   :  { %1182 = vmatpush3.bf16.msra.mxu1 %v1181_v12  ;;  %1254 = vmatpush3.bf16.msra.mxu0 %v1505_v23  ;;  %v1193_v23 = vpack.c.bf16 %v1656_v56, %v1651_v42 }
  0x8a   :  { %1183 = vmatprep.subr.bf16.mxu1 %v1413_v0  ;;  %1255 = vmatprep.subr.bf16.mxu0 %v1413_v0 }
  0x8d   :  { %1185 = vmatpush3.bf16.msra.mxu1 %v1184_v1  ;;  %1257 = vmatpush3.bf16.msra.mxu0 %v1523_v32  ;;  %v70_v32 = vld [vmem:[#allocation5] sm:$0xff] }
  0x8e   :  { %1186 = vmatprep.subr.bf16.mxu1 %v1413_v0  ;;  %1258 = vmatprep.subr.bf16.mxu0 %v1413_v0 }
  0x91   :  { %1188 = vmatpush3.bf16.msra.mxu1 %v1187_v13  ;;  %1260 = vmatpush3.bf16.msra.mxu0 %v1547_v41 }
  0x92   :  { %1189 = vmatprep.subr.bf16.mxu1 %v1413_v0  ;;  %1261 = vmatprep.subr.bf16.mxu0 %v1413_v0 }
  0x95   :  { %1191 = vmatpush3.bf16.msra.mxu1 %v1190_v18  ;;  %1263 = vmatpush3.bf16.msra.mxu0 %v1572_v53 }
  0x96   :  { %1192 = vmatprep.subr.bf16.mxu1 %v1413_v0  ;;  %1264 = vmatprep.subr.bf16.mxu0 %v1413_v0 }
  0x99   :  { %1194 = vmatpush3.bf16.msra.mxu1 %v1193_v23  ;;  %1266 = vmatpush3.bf16.msra.mxu0 %v1593_v63 }
  0x9c   :  { %1016 = vmatmul.mubr.f32.vlgmr.msra.gmra.mrb[0].mxu1 %v1539_v40  ;;  %1121 = vmatmul.mubr.f32.vlgmr.msra.gmra.mrb[0].mxu0 %v1517_v30 }
 0x16f   :  { %v429_v31 = vpop.f32.mrb[0].mxu1  ;;  %v724_v37 = vpop.f32.mrb[0].mxu0 }
 0x170   :  { %v1267_v38 = vadd.f32 %v724_v37, %v429_v31  ;;  %v1017_v41 = vpop.f32.mrb[1].mxu1  ;;  %v1122_v47 = vpop.f32.mrb[1].mxu0 }
 0x172   :  { %v728_v48 = vsub.f32 %v1267_v38, %v70_v32  ;;  %v737_v53 = vand.u32 2147483647, %v1267_v38 }
 0x174   :  { %v738_v57 = vsub.f32 0.0, %v737_v53  ;;  %v730_v58 = vmul.f32 %v728_v48, %v728_v48 }
 0x176   :  { %v739_v0 = vmul.f32 1.442695, %v738_v57  ;;  %733 = vst [vmem:[#allocation8] sm:$0xff] %v730_v58 }
 0x178   :  { %1286 = vpow2.f32 %v739_v0 }
 0x179   :  { %1367 = shalt.err (!%p1364_p0)
}
 0x17a   :  { %s1368_s29 = scalar_lea.hbm %s1753_s3, 128 }
 0x17b   :  { %p1369_p1 = scmp.ne.s32.totalorder %s1753_s3, %s1368_s29  ;;  %p1372_p2 = scmp.lt.u32.totalorder %s1368_s29, %s1753_s3 }
 0x17d   :  { %p1374_p3 = pnand %p1372_p2, %p1369_p1 }
 0x17f   :  { %1377 = shalt.err (!%p1374_p3)
}
 0x180   :  { %790 = dma.vmem_to_hbm [thread:$0]  %s788_s25, 128, %s1753_s3, [#allocation4]   ;;  %v767_v40 = vlaneseq  ;;  %v734_v34 = vmax.f32 %v1267_v38, 0.0  ;;  %v735_v52 = vmul.f32 %v1267_v38, %v70_v32 }
 0x181   :  { %s1417_s3 = smov [#allocation9]  }
 0x182   :  { %v1287_v30 = vpop.eup %1286  ;;  %v768_v5 = vshrl.u32 %v767_v40, 7  ;;  %v770_v19 = vand.u32 127, %v767_v40  ;;  %v736_v42 = vsub.f32 %v734_v34, %v735_v52  ;;  %s797_s10 = sshll.u32 %s1417_s3, 4  ;;  %s798_s10 = int_to_ptr.vmem [resolvable:$true] %s797_s10 }
 0x183   :  { %v741_v63 = vadd.f32 1.0, %v1287_v30  ;;  %v744_v6 = vmul.f32 -0.5, %v1287_v30  ;;  %v747_v54 = vand.u32 2147483647, %v1287_v30  ;;  %s1378_s1 = scalar_lea.vmem %s798_s10, 128  ;;  %p1383_p5 = scmp.lt.s32.totalorder %s798_s10, %s798_s10 }
 0x184   :  { %v773_v20 = vmul.u32 128, %v768_v5  ;;  %p1379_p4 = scmp.ne.s32.totalorder %s798_s10, %s1378_s1  ;;  %p1384_p6 = scmp.lt.s32.totalorder %s1378_s1, %s1378_s1 }
 0x185   :  { %1288 = vlog2.f32 %v741_v63  ;;  %v745_v28 = vadd.f32 1.0, %v744_v6  ;;  %vm748_vm1 = vcmp.lt.f32.partialorder %v747_v54, 0.0004427343 }
 0x186   :  { %v774_v35 = vadd.s32 %v773_v20, %v770_v19  ;;  %p1385_p7 = por %p1384_p6, %p1383_p5 }
 0x187   :  { %v746_v36 = vmul.f32 %v1287_v30, %v745_v28 }
 0x188   :  { %vm775_vm2 = vcmp.lt.s32.totalorder %v774_v35, 64  ;;  %p1386_p8 = pnand %p1385_p7, %p1379_p4 }
 0x18f   :  { %v1289_v39 = vpop.eup %1288 }
 0x190   :  { %v743_v55 = vmul.f32 0.6931472, %v1289_v39 }
 0x192   :  { %v749_v56 = vsel %vm748_vm1, %v746_v36, %v743_v55 }
 0x193   :  { %v750_v59 = vadd.f32 %v749_v56, %v736_v42 }
 0x195   :  { %v776_v60 = vsel %vm775_vm2, %v750_v59, 0.0 }
 0x196   :  { %780 = vst [vmem:[#allocation9] sm:$0xff] %v776_v60 }
 0x197   :  { %1389 = shalt.err (!%p1386_p8)
}
 0x198   :  { %s1390_s13 = scalar_lea.hbm %s1754_s4, 128 }
 0x199   :  { %p1391_p9 = scmp.ne.s32.totalorder %s1754_s4, %s1390_s13  ;;  %p1394_p10 = scmp.lt.u32.totalorder %s1390_s13, %s1754_s4 }
 0x19b   :  { %p1396_p11 = pnand %p1394_p10, %p1391_p9 }
 0x19d   :  { %1399 = shalt.err (!%p1396_p11)
}
 0x19e   :  { %800 = dma.vmem_to_hbm [thread:$0]  %s798_s10, 128, %s1754_s4, [#allocation10]  }
 0x19f   :  { %1404 = dma.done.wait [#allocation4], 128  }
 0x1a0   :  { %1405 = vsyncadd [#allocation4], 4294967168 }
 0x1a1   :  { %1406 = dma.done.wait [#allocation10], 128  }
 0x1a2   :  { %1407 = vsyncadd [#allocation10], 4294967168 }
 0x1a3   :  { %807 = vsyncpa [#allocation3], 1 }
 0x1a4   :  { %808 = vsyncpa [#allocation6], 1 }
 0x1a5   :  { %809 = vsyncpa [#allocation4], 1 }
 0x1a6   :  { %810 = vsyncpa [#allocation10], 1 }

</bundles_post_ra>
